<compile_context>
chip_gen: v5e
topology: v5e:2x2
jax: 0.10.0
libtpu: 0.0.40
codegen_flags: <defaults>
</compile_context>

<pallas_src>
import jax
import jax.numpy as jnp
from jax.experimental import pallas as pl
from jax.experimental.pallas import tpu as pltpu


def _ceil_to(v, m):
    return ((v + m - 1) // m) * m


def _vmem_limit_bytes():
    """Generation-aware scoped-VMEM limit (leave headroom for compiler scratch)."""
    try:
        cap = int(pltpu.get_tpu_info().vmem_capacity_bytes)
    except Exception:
        cap = 128 * 1024 * 1024  # v5e/v6e physical
    return max(16 * 1024 * 1024, min(cap - 8 * 1024 * 1024, 96 * 1024 * 1024))


def _pick_tile_hw(N, b_blk, C, O, HW, x_bytes, w_bytes, use_mxu, tile_budget,
                  requested=None):
    """Spatial tile width (lanes), multiple of 128, sized to the VMEM budget."""
    hw_ceil = _ceil_to(HW, 128)
    if requested is not None:
        return max(128, (min(requested, hw_ceil) // 128) * 128)

    cpad = max(8, _ceil_to(C, 8))
    opad = max(8, _ceil_to(O, 8))
    # Cap the VPU-path tile so the live (O, T) f32 accumulator fits in vregs.
    t_max = 2048 if use_mxu else 512
    # Budget: double-buffered x and out tiles + (double-buffered) VMEM weight.
    weight_buf = 2 * opad * cpad * w_bytes if use_mxu else 0
    avail = max(tile_budget - weight_buf, 512 * 1024)
    col_bytes = 2 * b_blk * (cpad + opad) * x_bytes
    t = t_max
    while t > 128 and t * col_bytes > avail:
        t //= 2
    t = min(t, hw_ceil)
    # If the whole problem would be one grid step, split once into >=512-lane
    # halves so a 2-TC part (v7x) can shard it; never go below 512 lanes.
    if pl.cdiv(N, b_blk) * pl.cdiv(HW, t) == 1 and t >= 1024:
        t = max(512, _ceil_to(t // 2, 128))
    return max(128, (t // 128) * 128)


def _make_mxu_kernel(norm, pre_scale, b_blk):
    def kernel(x_ref, w_ref, o_ref):
        # x_ref: (b_blk, C, T)   w_ref: (O, C) VMEM   o_ref: (b_blk, O, T)
        w = w_ref[...]                                    # native dtype
        for b in range(b_blk):
            x = x_ref[b]                                  # (C, T), native dtype
            inv = None
            if norm:
                xf = x.astype(jnp.float32)
                inv = jax.lax.rsqrt(jnp.sum(xf * xf, axis=0, keepdims=True))
                if pre_scale:                             # O > C: scale C*T elems
                    x = (xf * inv).astype(x.dtype)
            out = jnp.dot(w, x, preferred_element_type=jnp.float32)   # (O, T)
            if norm and not pre_scale:                    # O <= C: scale O*T elems
                out = out * inv
            o_ref[b] = out.astype(o_ref.dtype)
    return kernel


def _make_vpu_kernel(norm, pre_scale, b_blk, n_out, n_ch):
    def kernel(x_ref, w_ref, o_ref):
        # x_ref: (b_blk, C, T)   w_ref: (O*C,) f32 in SMEM   o_ref: (b_blk, O, T)
        for b in range(b_blk):
            x = x_ref[b].astype(jnp.float32)              # (C, T)
            inv = None
            if norm:
                inv = jax.lax.rsqrt(jnp.sum(x * x, axis=0, keepdims=True))
                if pre_scale:
                    x = x * inv
            rows = []
            for o in range(n_out):
                acc = x[0:1, :] * w_ref[o * n_ch]         # vector * SMEM scalar
                for c in range(1, n_ch):
                    acc = acc + x[c:c + 1, :] * w_ref[o * n_ch + c]
                rows.append(acc)
            out = jnp.concatenate(rows, axis=0)           # (O, T)
            if norm and not pre_scale:
                out = out * inv
            o_ref[b] = out.astype(o_ref.dtype)
    return kernel


def conv1o1_forward(x, weight, norm=True, tile_hw=None):
    """x: (N, C, H, W); weight: (O, C, 1, 1).  Returns (N, O, H, W)."""
    N, C, H, W = x.shape
    O = weight.shape[0]
    assert weight.shape == (O, C, 1, 1)

    HW = H * W
    x3 = x.reshape(N, C, HW)            # free reshape, NCHW-native
    w2d = weight.reshape(O, C)          # free reshape

    use_mxu = (C > 32) or (C * O > 256)
    pre_scale = bool(norm) and (O > C)  # scale the cheaper side of the dot

    x_bytes = x.dtype.itemsize
    w_bytes = w2d.dtype.itemsize

    vmem_limit = _vmem_limit_bytes()
    tile_budget = min(int(vmem_limit * 0.75), 40 * 1024 * 1024)

    hw_ceil = _ceil_to(HW, 128)
    # Batch-block small feature maps so each grid step moves a useful DMA.
    b_blk = min(N, 8) if hw_ceil <= 256 else 1

    t_hw = _pick_tile_hw(N, b_blk, C, O, HW, x_bytes, w_bytes, use_mxu,
                         tile_budget, tile_hw)
    grid = (pl.cdiv(N, b_blk), pl.cdiv(HW, t_hw))

    if use_mxu:
        kernel = _make_mxu_kernel(norm, pre_scale, b_blk)
        w_arg = w2d                                        # native dtype, VMEM
        w_spec = pl.BlockSpec((O, C), lambda b, j: (0, 0))
    else:
        kernel = _make_vpu_kernel(norm, pre_scale, b_blk, O, C)
        w_arg = w2d.reshape(-1).astype(jnp.float32)        # scalar weights, SMEM
        w_spec = pl.BlockSpec(memory_space=pltpu.MemorySpace.SMEM)

    out3 = pl.pallas_call(
        kernel,
        out_shape=jax.ShapeDtypeStruct((N, O, HW), x.dtype),
        grid_spec=pltpu.PrefetchScalarGridSpec(
            num_scalar_prefetch=0,
            grid=grid,
            in_specs=[
                # x tile: (b_blk, C, t_hw); channels full-extent, HW lane-dense.
                pl.BlockSpec((b_blk, C, t_hw), lambda b, j: (b, 0, j)),
                w_spec,
            ],
            out_specs=pl.BlockSpec((b_blk, O, t_hw), lambda b, j: (b, 0, j)),
        ),
        compiler_params=pltpu.CompilerParams(
            dimension_semantics=("parallel", "parallel"),
            vmem_limit_bytes=int(vmem_limit)),
    )(x3, w_arg)

    return out3.reshape(N, O, H, W)


if __name__ == "__main__":
    key = jax.random.PRNGKey(0)
    k1, k2, k3, k4 = jax.random.split(key, 4)

    # --- Case 1: tiny C/O -> SMEM scalar-weight VPU path, batch-blocked ---
    N, C, H, W, O = 2, 4, 16, 16, 8
    x = jax.random.normal(k1, (N, C, H, W), dtype=jnp.float32)
    w = jax.random.normal(k2, (O, C, 1, 1), dtype=jnp.float32)

    out = jax.block_until_ready(conv1o1_forward(x, w, norm=True))
    x_hat = x / jnp.linalg.norm(x, axis=1, keepdims=True)
    ref = jnp.einsum("nchw,oc->nohw", x_hat, w.reshape(O, C),
                     precision=jax.lax.Precision.HIGHEST)
    assert out.shape == (N, O, H, W)
    assert jnp.allclose(out, ref, atol=1e-4, rtol=1e-4)

    # norm=False branch of the module.
    out_nn = jax.block_until_ready(conv1o1_forward(x, w, norm=False))
    ref_nn = jnp.einsum("nchw,oc->nohw", x, w.reshape(O, C),
                        precision=jax.lax.Precision.HIGHEST)
    assert jnp.allclose(out_nn, ref_nn, atol=1e-4, rtol=1e-4)

    # --- Case 2: larger C/O -> MXU path with a ragged spatial tail (HW=100) ---
    N2, C2, H2, W2, O2 = 1, 64, 10, 10, 32
    x2 = jax.random.normal(k3, (N2, C2, H2, W2), dtype=jnp.float32)
    w2 = jax.random.normal(k4, (O2, C2, 1, 1), dtype=jnp.float32)
    out2 = jax.block_until_ready(conv1o1_forward(x2, w2, norm=True))
    xh2 = x2 / jnp.linalg.norm(x2, axis=1, keepdims=True)
    ref2 = jnp.einsum("nchw,oc->nohw", xh2, w2.reshape(O2, C2),
                      precision=jax.lax.Precision.HIGHEST)
    assert out2.shape == (N2, O2, H2, W2)
    assert jnp.allclose(out2, ref2, atol=5e-3, rtol=5e-3)

    print("KERNEL_OK")
</pallas_src>

<mosaic_0001>
module attributes {stable_mosaic.version = 11 : i64} {
  func.func @kernel(%arg0: i32, %arg1: i32, %arg2: memref<2x4x256xf32, #tpu.memory_space<vmem>>, %arg3: memref<32xf32, #tpu.memory_space<smem>>, %arg4: memref<2x8x256xf32, #tpu.memory_space<vmem>>) attributes {dimension_semantics = [#tpu.dimension_semantics<parallel>, #tpu.dimension_semantics<parallel>], iteration_bounds = array<i64: 1, 1>, scalar_prefetch = 0 : i64, scratch_operands = 0 : i64, tpu.core_type = #tpu.core_type<tc>, window_params = [{transform_indices = @transform_0, window_bounds = array<i64: 2, 4, 256>}, {transform_indices = @transform_1, window_bounds = array<i64: 32>}, {transform_indices = @transform_2, window_bounds = array<i64: 2, 8, 256>}]} {
    %c0 = arith.constant 0 : index
    %c0_0 = arith.constant 0 : index
    %c0_1 = arith.constant 0 : index
    %0 = vector.load %arg2[%c0, %c0_0, %c0_1] : memref<2x4x256xf32, #tpu.memory_space<vmem>>, vector<1x4x256xf32>
    %1 = vector.shape_cast %0 : vector<1x4x256xf32> to vector<4x256xf32>
    %2 = arith.mulf %1, %1 : vector<4x256xf32>
    %cst = arith.constant dense<0.000000e+00> : vector<256xf32>
    %3 = vector.multi_reduction <add>, %2, %cst [0] : vector<4x256xf32> to vector<256xf32>
    %4 = vector.shape_cast %3 : vector<256xf32> to vector<1x256xf32>
    %5 = math.rsqrt %4 : vector<1x256xf32>
    %6 = vector.broadcast %5 : vector<1x256xf32> to vector<4x256xf32>
    %7 = arith.mulf %1, %6 : vector<4x256xf32>
    %8 = vector.extract_strided_slice %7 {offsets = [0, 0], sizes = [1, 256], strides = [1, 1]} : vector<4x256xf32> to vector<1x256xf32>
    %c0_2 = arith.constant 0 : index
    %9 = memref.load %arg3[%c0_2] : memref<32xf32, #tpu.memory_space<smem>>
    %10 = vector.broadcast %9 : f32 to vector<1x256xf32>
    %11 = arith.mulf %8, %10 : vector<1x256xf32>
    %12 = vector.extract_strided_slice %7 {offsets = [1, 0], sizes = [1, 256], strides = [1, 1]} : vector<4x256xf32> to vector<1x256xf32>
    %c1 = arith.constant 1 : index
    %13 = memref.load %arg3[%c1] : memref<32xf32, #tpu.memory_space<smem>>
    %14 = vector.broadcast %13 : f32 to vector<1x256xf32>
    %15 = arith.mulf %12, %14 : vector<1x256xf32>
    %16 = arith.addf %11, %15 : vector<1x256xf32>
    %17 = vector.extract_strided_slice %7 {offsets = [2, 0], sizes = [1, 256], strides = [1, 1]} : vector<4x256xf32> to vector<1x256xf32>
    %c2 = arith.constant 2 : index
    %18 = memref.load %arg3[%c2] : memref<32xf32, #tpu.memory_space<smem>>
    %19 = vector.broadcast %18 : f32 to vector<1x256xf32>
    %20 = arith.mulf %17, %19 : vector<1x256xf32>
    %21 = arith.addf %16, %20 : vector<1x256xf32>
    %22 = vector.extract_strided_slice %7 {offsets = [3, 0], sizes = [1, 256], strides = [1, 1]} : vector<4x256xf32> to vector<1x256xf32>
    %c3 = arith.constant 3 : index
    %23 = memref.load %arg3[%c3] : memref<32xf32, #tpu.memory_space<smem>>
    %24 = vector.broadcast %23 : f32 to vector<1x256xf32>
    %25 = arith.mulf %22, %24 : vector<1x256xf32>
    %26 = arith.addf %21, %25 : vector<1x256xf32>
    %27 = vector.extract_strided_slice %7 {offsets = [0, 0], sizes = [1, 256], strides = [1, 1]} : vector<4x256xf32> to vector<1x256xf32>
    %c4 = arith.constant 4 : index
    %28 = memref.load %arg3[%c4] : memref<32xf32, #tpu.memory_space<smem>>
    %29 = vector.broadcast %28 : f32 to vector<1x256xf32>
    %30 = arith.mulf %27, %29 : vector<1x256xf32>
    %31 = vector.extract_strided_slice %7 {offsets = [1, 0], sizes = [1, 256], strides = [1, 1]} : vector<4x256xf32> to vector<1x256xf32>
    %c5 = arith.constant 5 : index
    %32 = memref.load %arg3[%c5] : memref<32xf32, #tpu.memory_space<smem>>
    %33 = vector.broadcast %32 : f32 to vector<1x256xf32>
    %34 = arith.mulf %31, %33 : vector<1x256xf32>
    %35 = arith.addf %30, %34 : vector<1x256xf32>
    %36 = vector.extract_strided_slice %7 {offsets = [2, 0], sizes = [1, 256], strides = [1, 1]} : vector<4x256xf32> to vector<1x256xf32>
    %c6 = arith.constant 6 : index
    %37 = memref.load %arg3[%c6] : memref<32xf32, #tpu.memory_space<smem>>
    %38 = vector.broadcast %37 : f32 to vector<1x256xf32>
    %39 = arith.mulf %36, %38 : vector<1x256xf32>
    %40 = arith.addf %35, %39 : vector<1x256xf32>
    %41 = vector.extract_strided_slice %7 {offsets = [3, 0], sizes = [1, 256], strides = [1, 1]} : vector<4x256xf32> to vector<1x256xf32>
    %c7 = arith.constant 7 : index
    %42 = memref.load %arg3[%c7] : memref<32xf32, #tpu.memory_space<smem>>
    %43 = vector.broadcast %42 : f32 to vector<1x256xf32>
    %44 = arith.mulf %41, %43 : vector<1x256xf32>
    %45 = arith.addf %40, %44 : vector<1x256xf32>
    %46 = vector.extract_strided_slice %7 {offsets = [0, 0], sizes = [1, 256], strides = [1, 1]} : vector<4x256xf32> to vector<1x256xf32>
    %c8 = arith.constant 8 : index
    %47 = memref.load %arg3[%c8] : memref<32xf32, #tpu.memory_space<smem>>
    %48 = vector.broadcast %47 : f32 to vector<1x256xf32>
    %49 = arith.mulf %46, %48 : vector<1x256xf32>
    %50 = vector.extract_strided_slice %7 {offsets = [1, 0], sizes = [1, 256], strides = [1, 1]} : vector<4x256xf32> to vector<1x256xf32>
    %c9 = arith.constant 9 : index
    %51 = memref.load %arg3[%c9] : memref<32xf32, #tpu.memory_space<smem>>
    %52 = vector.broadcast %51 : f32 to vector<1x256xf32>
    %53 = arith.mulf %50, %52 : vector<1x256xf32>
    %54 = arith.addf %49, %53 : vector<1x256xf32>
    %55 = vector.extract_strided_slice %7 {offsets = [2, 0], sizes = [1, 256], strides = [1, 1]} : vector<4x256xf32> to vector<1x256xf32>
    %c10 = arith.constant 10 : index
    %56 = memref.load %arg3[%c10] : memref<32xf32, #tpu.memory_space<smem>>
    %57 = vector.broadcast %56 : f32 to vector<1x256xf32>
    %58 = arith.mulf %55, %57 : vector<1x256xf32>
    %59 = arith.addf %54, %58 : vector<1x256xf32>
    %60 = vector.extract_strided_slice %7 {offsets = [3, 0], sizes = [1, 256], strides = [1, 1]} : vector<4x256xf32> to vector<1x256xf32>
    %c11 = arith.constant 11 : index
    %61 = memref.load %arg3[%c11] : memref<32xf32, #tpu.memory_space<smem>>
    %62 = vector.broadcast %61 : f32 to vector<1x256xf32>
    %63 = arith.mulf %60, %62 : vector<1x256xf32>
    %64 = arith.addf %59, %63 : vector<1x256xf32>
    %65 = vector.extract_strided_slice %7 {offsets = [0, 0], sizes = [1, 256], strides = [1, 1]} : vector<4x256xf32> to vector<1x256xf32>
    %c12 = arith.constant 12 : index
    %66 = memref.load %arg3[%c12] : memref<32xf32, #tpu.memory_space<smem>>
    %67 = vector.broadcast %66 : f32 to vector<1x256xf32>
    %68 = arith.mulf %65, %67 : vector<1x256xf32>
    %69 = vector.extract_strided_slice %7 {offsets = [1, 0], sizes = [1, 256], strides = [1, 1]} : vector<4x256xf32> to vector<1x256xf32>
    %c13 = arith.constant 13 : index
    %70 = memref.load %arg3[%c13] : memref<32xf32, #tpu.memory_space<smem>>
    %71 = vector.broadcast %70 : f32 to vector<1x256xf32>
    %72 = arith.mulf %69, %71 : vector<1x256xf32>
    %73 = arith.addf %68, %72 : vector<1x256xf32>
    %74 = vector.extract_strided_slice %7 {offsets = [2, 0], sizes = [1, 256], strides = [1, 1]} : vector<4x256xf32> to vector<1x256xf32>
    %c14 = arith.constant 14 : index
    %75 = memref.load %arg3[%c14] : memref<32xf32, #tpu.memory_space<smem>>
    %76 = vector.broadcast %75 : f32 to vector<1x256xf32>
    %77 = arith.mulf %74, %76 : vector<1x256xf32>
    %78 = arith.addf %73, %77 : vector<1x256xf32>
    %79 = vector.extract_strided_slice %7 {offsets = [3, 0], sizes = [1, 256], strides = [1, 1]} : vector<4x256xf32> to vector<1x256xf32>
    %c15 = arith.constant 15 : index
    %80 = memref.load %arg3[%c15] : memref<32xf32, #tpu.memory_space<smem>>
    %81 = vector.broadcast %80 : f32 to vector<1x256xf32>
    %82 = arith.mulf %79, %81 : vector<1x256xf32>
    %83 = arith.addf %78, %82 : vector<1x256xf32>
    %84 = vector.extract_strided_slice %7 {offsets = [0, 0], sizes = [1, 256], strides = [1, 1]} : vector<4x256xf32> to vector<1x256xf32>
    %c16 = arith.constant 16 : index
    %85 = memref.load %arg3[%c16] : memref<32xf32, #tpu.memory_space<smem>>
    %86 = vector.broadcast %85 : f32 to vector<1x256xf32>
    %87 = arith.mulf %84, %86 : vector<1x256xf32>
    %88 = vector.extract_strided_slice %7 {offsets = [1, 0], sizes = [1, 256], strides = [1, 1]} : vector<4x256xf32> to vector<1x256xf32>
    %c17 = arith.constant 17 : index
    %89 = memref.load %arg3[%c17] : memref<32xf32, #tpu.memory_space<smem>>
    %90 = vector.broadcast %89 : f32 to vector<1x256xf32>
    %91 = arith.mulf %88, %90 : vector<1x256xf32>
    %92 = arith.addf %87, %91 : vector<1x256xf32>
    %93 = vector.extract_strided_slice %7 {offsets = [2, 0], sizes = [1, 256], strides = [1, 1]} : vector<4x256xf32> to vector<1x256xf32>
    %c18 = arith.constant 18 : index
    %94 = memref.load %arg3[%c18] : memref<32xf32, #tpu.memory_space<smem>>
    %95 = vector.broadcast %94 : f32 to vector<1x256xf32>
    %96 = arith.mulf %93, %95 : vector<1x256xf32>
    %97 = arith.addf %92, %96 : vector<1x256xf32>
    %98 = vector.extract_strided_slice %7 {offsets = [3, 0], sizes = [1, 256], strides = [1, 1]} : vector<4x256xf32> to vector<1x256xf32>
    %c19 = arith.constant 19 : index
    %99 = memref.load %arg3[%c19] : memref<32xf32, #tpu.memory_space<smem>>
    %100 = vector.broadcast %99 : f32 to vector<1x256xf32>
    %101 = arith.mulf %98, %100 : vector<1x256xf32>
    %102 = arith.addf %97, %101 : vector<1x256xf32>
    %103 = vector.extract_strided_slice %7 {offsets = [0, 0], sizes = [1, 256], strides = [1, 1]} : vector<4x256xf32> to vector<1x256xf32>
    %c20 = arith.constant 20 : index
    %104 = memref.load %arg3[%c20] : memref<32xf32, #tpu.memory_space<smem>>
    %105 = vector.broadcast %104 : f32 to vector<1x256xf32>
    %106 = arith.mulf %103, %105 : vector<1x256xf32>
    %107 = vector.extract_strided_slice %7 {offsets = [1, 0], sizes = [1, 256], strides = [1, 1]} : vector<4x256xf32> to vector<1x256xf32>
    %c21 = arith.constant 21 : index
    %108 = memref.load %arg3[%c21] : memref<32xf32, #tpu.memory_space<smem>>
    %109 = vector.broadcast %108 : f32 to vector<1x256xf32>
    %110 = arith.mulf %107, %109 : vector<1x256xf32>
    %111 = arith.addf %106, %110 : vector<1x256xf32>
    %112 = vector.extract_strided_slice %7 {offsets = [2, 0], sizes = [1, 256], strides = [1, 1]} : vector<4x256xf32> to vector<1x256xf32>
    %c22 = arith.constant 22 : index
    %113 = memref.load %arg3[%c22] : memref<32xf32, #tpu.memory_space<smem>>
    %114 = vector.broadcast %113 : f32 to vector<1x256xf32>
    %115 = arith.mulf %112, %114 : vector<1x256xf32>
    %116 = arith.addf %111, %115 : vector<1x256xf32>
    %117 = vector.extract_strided_slice %7 {offsets = [3, 0], sizes = [1, 256], strides = [1, 1]} : vector<4x256xf32> to vector<1x256xf32>
    %c23 = arith.constant 23 : index
    %118 = memref.load %arg3[%c23] : memref<32xf32, #tpu.memory_space<smem>>
    %119 = vector.broadcast %118 : f32 to vector<1x256xf32>
    %120 = arith.mulf %117, %119 : vector<1x256xf32>
    %121 = arith.addf %116, %120 : vector<1x256xf32>
    %122 = vector.extract_strided_slice %7 {offsets = [0, 0], sizes = [1, 256], strides = [1, 1]} : vector<4x256xf32> to vector<1x256xf32>
    %c24 = arith.constant 24 : index
    %123 = memref.load %arg3[%c24] : memref<32xf32, #tpu.memory_space<smem>>
    %124 = vector.broadcast %123 : f32 to vector<1x256xf32>
    %125 = arith.mulf %122, %124 : vector<1x256xf32>
    %126 = vector.extract_strided_slice %7 {offsets = [1, 0], sizes = [1, 256], strides = [1, 1]} : vector<4x256xf32> to vector<1x256xf32>
    %c25 = arith.constant 25 : index
    %127 = memref.load %arg3[%c25] : memref<32xf32, #tpu.memory_space<smem>>
    %128 = vector.broadcast %127 : f32 to vector<1x256xf32>
    %129 = arith.mulf %126, %128 : vector<1x256xf32>
    %130 = arith.addf %125, %129 : vector<1x256xf32>
    %131 = vector.extract_strided_slice %7 {offsets = [2, 0], sizes = [1, 256], strides = [1, 1]} : vector<4x256xf32> to vector<1x256xf32>
    %c26 = arith.constant 26 : index
    %132 = memref.load %arg3[%c26] : memref<32xf32, #tpu.memory_space<smem>>
    %133 = vector.broadcast %132 : f32 to vector<1x256xf32>
    %134 = arith.mulf %131, %133 : vector<1x256xf32>
    %135 = arith.addf %130, %134 : vector<1x256xf32>
    %136 = vector.extract_strided_slice %7 {offsets = [3, 0], sizes = [1, 256], strides = [1, 1]} : vector<4x256xf32> to vector<1x256xf32>
    %c27 = arith.constant 27 : index
    %137 = memref.load %arg3[%c27] : memref<32xf32, #tpu.memory_space<smem>>
    %138 = vector.broadcast %137 : f32 to vector<1x256xf32>
    %139 = arith.mulf %136, %138 : vector<1x256xf32>
    %140 = arith.addf %135, %139 : vector<1x256xf32>
    %141 = vector.extract_strided_slice %7 {offsets = [0, 0], sizes = [1, 256], strides = [1, 1]} : vector<4x256xf32> to vector<1x256xf32>
    %c28 = arith.constant 28 : index
    %142 = memref.load %arg3[%c28] : memref<32xf32, #tpu.memory_space<smem>>
    %143 = vector.broadcast %142 : f32 to vector<1x256xf32>
    %144 = arith.mulf %141, %143 : vector<1x256xf32>
    %145 = vector.extract_strided_slice %7 {offsets = [1, 0], sizes = [1, 256], strides = [1, 1]} : vector<4x256xf32> to vector<1x256xf32>
    %c29 = arith.constant 29 : index
    %146 = memref.load %arg3[%c29] : memref<32xf32, #tpu.memory_space<smem>>
    %147 = vector.broadcast %146 : f32 to vector<1x256xf32>
    %148 = arith.mulf %145, %147 : vector<1x256xf32>
    %149 = arith.addf %144, %148 : vector<1x256xf32>
    %150 = vector.extract_strided_slice %7 {offsets = [2, 0], sizes = [1, 256], strides = [1, 1]} : vector<4x256xf32> to vector<1x256xf32>
    %c30 = arith.constant 30 : index
    %151 = memref.load %arg3[%c30] : memref<32xf32, #tpu.memory_space<smem>>
    %152 = vector.broadcast %151 : f32 to vector<1x256xf32>
    %153 = arith.mulf %150, %152 : vector<1x256xf32>
    %154 = arith.addf %149, %153 : vector<1x256xf32>
    %155 = vector.extract_strided_slice %7 {offsets = [3, 0], sizes = [1, 256], strides = [1, 1]} : vector<4x256xf32> to vector<1x256xf32>
    %c31 = arith.constant 31 : index
    %156 = memref.load %arg3[%c31] : memref<32xf32, #tpu.memory_space<smem>>
    %157 = vector.broadcast %156 : f32 to vector<1x256xf32>
    %158 = arith.mulf %155, %157 : vector<1x256xf32>
    %159 = arith.addf %154, %158 : vector<1x256xf32>
    %160 = tpu.concatenate %26, %45, %64, %83, %102, %121, %140, %159 in 0 : vector<1x256xf32>, vector<1x256xf32>, vector<1x256xf32>, vector<1x256xf32>, vector<1x256xf32>, vector<1x256xf32>, vector<1x256xf32>, vector<1x256xf32> -> vector<8x256xf32>
    %c0_3 = arith.constant 0 : index
    %c0_4 = arith.constant 0 : index
    %c0_5 = arith.constant 0 : index
    %161 = vector.load %arg4[%c0_3, %c0_4, %c0_5] : memref<2x8x256xf32, #tpu.memory_space<vmem>>, vector<1x8x256xf32>
    %162 = vector.shape_cast %161 : vector<1x8x256xf32> to vector<8x256xf32>
    %163 = vector.shape_cast %160 : vector<8x256xf32> to vector<1x8x256xf32>
    tpu.vector_store %arg4[%c0_3, %c0_4, %c0_5], %163 {strides = array<i32>} : memref<2x8x256xf32, #tpu.memory_space<vmem>>, vector<1x8x256xf32>,
    %c1_6 = arith.constant 1 : index
    %c0_7 = arith.constant 0 : index
    %c0_8 = arith.constant 0 : index
    %164 = vector.load %arg2[%c1_6, %c0_7, %c0_8] : memref<2x4x256xf32, #tpu.memory_space<vmem>>, vector<1x4x256xf32>
    %165 = vector.shape_cast %164 : vector<1x4x256xf32> to vector<4x256xf32>
    %166 = arith.mulf %165, %165 : vector<4x256xf32>
    %cst_9 = arith.constant dense<0.000000e+00> : vector<256xf32>
    %167 = vector.multi_reduction <add>, %166, %cst_9 [0] : vector<4x256xf32> to vector<256xf32>
    %168 = vector.shape_cast %167 : vector<256xf32> to vector<1x256xf32>
    %169 = math.rsqrt %168 : vector<1x256xf32>
    %170 = vector.broadcast %169 : vector<1x256xf32> to vector<4x256xf32>
    %171 = arith.mulf %165, %170 : vector<4x256xf32>
    %172 = vector.extract_strided_slice %171 {offsets = [0, 0], sizes = [1, 256], strides = [1, 1]} : vector<4x256xf32> to vector<1x256xf32>
    %c0_10 = arith.constant 0 : index
    %173 = memref.load %arg3[%c0_10] : memref<32xf32, #tpu.memory_space<smem>>
    %174 = vector.broadcast %173 : f32 to vector<1x256xf32>
    %175 = arith.mulf %172, %174 : vector<1x256xf32>
    %176 = vector.extract_strided_slice %171 {offsets = [1, 0], sizes = [1, 256], strides = [1, 1]} : vector<4x256xf32> to vector<1x256xf32>
    %c1_11 = arith.constant 1 : index
    %177 = memref.load %arg3[%c1_11] : memref<32xf32, #tpu.memory_space<smem>>
    %178 = vector.broadcast %177 : f32 to vector<1x256xf32>
    %179 = arith.mulf %176, %178 : vector<1x256xf32>
    %180 = arith.addf %175, %179 : vector<1x256xf32>
    %181 = vector.extract_strided_slice %171 {offsets = [2, 0], sizes = [1, 256], strides = [1, 1]} : vector<4x256xf32> to vector<1x256xf32>
    %c2_12 = arith.constant 2 : index
    %182 = memref.load %arg3[%c2_12] : memref<32xf32, #tpu.memory_space<smem>>
    %183 = vector.broadcast %182 : f32 to vector<1x256xf32>
    %184 = arith.mulf %181, %183 : vector<1x256xf32>
    %185 = arith.addf %180, %184 : vector<1x256xf32>
    %186 = vector.extract_strided_slice %171 {offsets = [3, 0], sizes = [1, 256], strides = [1, 1]} : vector<4x256xf32> to vector<1x256xf32>
    %c3_13 = arith.constant 3 : index
    %187 = memref.load %arg3[%c3_13] : memref<32xf32, #tpu.memory_space<smem>>
    %188 = vector.broadcast %187 : f32 to vector<1x256xf32>
    %189 = arith.mulf %186, %188 : vector<1x256xf32>
    %190 = arith.addf %185, %189 : vector<1x256xf32>
    %191 = vector.extract_strided_slice %171 {offsets = [0, 0], sizes = [1, 256], strides = [1, 1]} : vector<4x256xf32> to vector<1x256xf32>
    %c4_14 = arith.constant 4 : index
    %192 = memref.load %arg3[%c4_14] : memref<32xf32, #tpu.memory_space<smem>>
    %193 = vector.broadcast %192 : f32 to vector<1x256xf32>
    %194 = arith.mulf %191, %193 : vector<1x256xf32>
    %195 = vector.extract_strided_slice %171 {offsets = [1, 0], sizes = [1, 256], strides = [1, 1]} : vector<4x256xf32> to vector<1x256xf32>
    %c5_15 = arith.constant 5 : index
    %196 = memref.load %arg3[%c5_15] : memref<32xf32, #tpu.memory_space<smem>>
    %197 = vector.broadcast %196 : f32 to vector<1x256xf32>
    %198 = arith.mulf %195, %197 : vector<1x256xf32>
    %199 = arith.addf %194, %198 : vector<1x256xf32>
    %200 = vector.extract_strided_slice %171 {offsets = [2, 0], sizes = [1, 256], strides = [1, 1]} : vector<4x256xf32> to vector<1x256xf32>
    %c6_16 = arith.constant 6 : index
    %201 = memref.load %arg3[%c6_16] : memref<32xf32, #tpu.memory_space<smem>>
    %202 = vector.broadcast %201 : f32 to vector<1x256xf32>
    %203 = arith.mulf %200, %202 : vector<1x256xf32>
    %204 = arith.addf %199, %203 : vector<1x256xf32>
    %205 = vector.extract_strided_slice %171 {offsets = [3, 0], sizes = [1, 256], strides = [1, 1]} : vector<4x256xf32> to vector<1x256xf32>
    %c7_17 = arith.constant 7 : index
    %206 = memref.load %arg3[%c7_17] : memref<32xf32, #tpu.memory_space<smem>>
    %207 = vector.broadcast %206 : f32 to vector<1x256xf32>
    %208 = arith.mulf %205, %207 : vector<1x256xf32>
    %209 = arith.addf %204, %208 : vector<1x256xf32>
    %210 = vector.extract_strided_slice %171 {offsets = [0, 0], sizes = [1, 256], strides = [1, 1]} : vector<4x256xf32> to vector<1x256xf32>
    %c8_18 = arith.constant 8 : index
    %211 = memref.load %arg3[%c8_18] : memref<32xf32, #tpu.memory_space<smem>>
    %212 = vector.broadcast %211 : f32 to vector<1x256xf32>
    %213 = arith.mulf %210, %212 : vector<1x256xf32>
    %214 = vector.extract_strided_slice %171 {offsets = [1, 0], sizes = [1, 256], strides = [1, 1]} : vector<4x256xf32> to vector<1x256xf32>
    %c9_19 = arith.constant 9 : index
    %215 = memref.load %arg3[%c9_19] : memref<32xf32, #tpu.memory_space<smem>>
    %216 = vector.broadcast %215 : f32 to vector<1x256xf32>
    %217 = arith.mulf %214, %216 : vector<1x256xf32>
    %218 = arith.addf %213, %217 : vector<1x256xf32>
    %219 = vector.extract_strided_slice %171 {offsets = [2, 0], sizes = [1, 256], strides = [1, 1]} : vector<4x256xf32> to vector<1x256xf32>
    %c10_20 = arith.constant 10 : index
    %220 = memref.load %arg3[%c10_20] : memref<32xf32, #tpu.memory_space<smem>>
    %221 = vector.broadcast %220 : f32 to vector<1x256xf32>
    %222 = arith.mulf %219, %221 : vector<1x256xf32>
    %223 = arith.addf %218, %222 : vector<1x256xf32>
    %224 = vector.extract_strided_slice %171 {offsets = [3, 0], sizes = [1, 256], strides = [1, 1]} : vector<4x256xf32> to vector<1x256xf32>
    %c11_21 = arith.constant 11 : index
    %225 = memref.load %arg3[%c11_21] : memref<32xf32, #tpu.memory_space<smem>>
    %226 = vector.broadcast %225 : f32 to vector<1x256xf32>
    %227 = arith.mulf %224, %226 : vector<1x256xf32>
    %228 = arith.addf %223, %227 : vector<1x256xf32>
    %229 = vector.extract_strided_slice %171 {offsets = [0, 0], sizes = [1, 256], strides = [1, 1]} : vector<4x256xf32> to vector<1x256xf32>
    %c12_22 = arith.constant 12 : index
    %230 = memref.load %arg3[%c12_22] : memref<32xf32, #tpu.memory_space<smem>>
    %231 = vector.broadcast %230 : f32 to vector<1x256xf32>
    %232 = arith.mulf %229, %231 : vector<1x256xf32>
    %233 = vector.extract_strided_slice %171 {offsets = [1, 0], sizes = [1, 256], strides = [1, 1]} : vector<4x256xf32> to vector<1x256xf32>
    %c13_23 = arith.constant 13 : index
    %234 = memref.load %arg3[%c13_23] : memref<32xf32, #tpu.memory_space<smem>>
    %235 = vector.broadcast %234 : f32 to vector<1x256xf32>
    %236 = arith.mulf %233, %235 : vector<1x256xf32>
    %237 = arith.addf %232, %236 : vector<1x256xf32>
    %238 = vector.extract_strided_slice %171 {offsets = [2, 0], sizes = [1, 256], strides = [1, 1]} : vector<4x256xf32> to vector<1x256xf32>
    %c14_24 = arith.constant 14 : index
    %239 = memref.load %arg3[%c14_24] : memref<32xf32, #tpu.memory_space<smem>>
    %240 = vector.broadcast %239 : f32 to vector<1x256xf32>
    %241 = arith.mulf %238, %240 : vector<1x256xf32>
    %242 = arith.addf %237, %241 : vector<1x256xf32>
    %243 = vector.extract_strided_slice %171 {offsets = [3, 0], sizes = [1, 256], strides = [1, 1]} : vector<4x256xf32> to vector<1x256xf32>
    %c15_25 = arith.constant 15 : index
    %244 = memref.load %arg3[%c15_25] : memref<32xf32, #tpu.memory_space<smem>>
    %245 = vector.broadcast %244 : f32 to vector<1x256xf32>
    %246 = arith.mulf %243, %245 : vector<1x256xf32>
    %247 = arith.addf %242, %246 : vector<1x256xf32>
    %248 = vector.extract_strided_slice %171 {offsets = [0, 0], sizes = [1, 256], strides = [1, 1]} : vector<4x256xf32> to vector<1x256xf32>
    %c16_26 = arith.constant 16 : index
    %249 = memref.load %arg3[%c16_26] : memref<32xf32, #tpu.memory_space<smem>>
    %250 = vector.broadcast %249 : f32 to vector<1x256xf32>
    %251 = arith.mulf %248, %250 : vector<1x256xf32>
    %252 = vector.extract_strided_slice %171 {offsets = [1, 0], sizes = [1, 256], strides = [1, 1]} : vector<4x256xf32> to vector<1x256xf32>
    %c17_27 = arith.constant 17 : index
    %253 = memref.load %arg3[%c17_27] : memref<32xf32, #tpu.memory_space<smem>>
    %254 = vector.broadcast %253 : f32 to vector<1x256xf32>
    %255 = arith.mulf %252, %254 : vector<1x256xf32>
    %256 = arith.addf %251, %255 : vector<1x256xf32>
    %257 = vector.extract_strided_slice %171 {offsets = [2, 0], sizes = [1, 256], strides = [1, 1]} : vector<4x256xf32> to vector<1x256xf32>
    %c18_28 = arith.constant 18 : index
    %258 = memref.load %arg3[%c18_28] : memref<32xf32, #tpu.memory_space<smem>>
    %259 = vector.broadcast %258 : f32 to vector<1x256xf32>
    %260 = arith.mulf %257, %259 : vector<1x256xf32>
    %261 = arith.addf %256, %260 : vector<1x256xf32>
    %262 = vector.extract_strided_slice %171 {offsets = [3, 0], sizes = [1, 256], strides = [1, 1]} : vector<4x256xf32> to vector<1x256xf32>
    %c19_29 = arith.constant 19 : index
    %263 = memref.load %arg3[%c19_29] : memref<32xf32, #tpu.memory_space<smem>>
    %264 = vector.broadcast %263 : f32 to vector<1x256xf32>
    %265 = arith.mulf %262, %264 : vector<1x256xf32>
    %266 = arith.addf %261, %265 : vector<1x256xf32>
    %267 = vector.extract_strided_slice %171 {offsets = [0, 0], sizes = [1, 256], strides = [1, 1]} : vector<4x256xf32> to vector<1x256xf32>
    %c20_30 = arith.constant 20 : index
    %268 = memref.load %arg3[%c20_30] : memref<32xf32, #tpu.memory_space<smem>>
    %269 = vector.broadcast %268 : f32 to vector<1x256xf32>
    %270 = arith.mulf %267, %269 : vector<1x256xf32>
    %271 = vector.extract_strided_slice %171 {offsets = [1, 0], sizes = [1, 256], strides = [1, 1]} : vector<4x256xf32> to vector<1x256xf32>
    %c21_31 = arith.constant 21 : index
    %272 = memref.load %arg3[%c21_31] : memref<32xf32, #tpu.memory_space<smem>>
    %273 = vector.broadcast %272 : f32 to vector<1x256xf32>
    %274 = arith.mulf %271, %273 : vector<1x256xf32>
    %275 = arith.addf %270, %274 : vector<1x256xf32>
    %276 = vector.extract_strided_slice %171 {offsets = [2, 0], sizes = [1, 256], strides = [1, 1]} : vector<4x256xf32> to vector<1x256xf32>
    %c22_32 = arith.constant 22 : index
    %277 = memref.load %arg3[%c22_32] : memref<32xf32, #tpu.memory_space<smem>>
    %278 = vector.broadcast %277 : f32 to vector<1x256xf32>
    %279 = arith.mulf %276, %278 : vector<1x256xf32>
    %280 = arith.addf %275, %279 : vector<1x256xf32>
    %281 = vector.extract_strided_slice %171 {offsets = [3, 0], sizes = [1, 256], strides = [1, 1]} : vector<4x256xf32> to vector<1x256xf32>
    %c23_33 = arith.constant 23 : index
    %282 = memref.load %arg3[%c23_33] : memref<32xf32, #tpu.memory_space<smem>>
    %283 = vector.broadcast %282 : f32 to vector<1x256xf32>
    %284 = arith.mulf %281, %283 : vector<1x256xf32>
    %285 = arith.addf %280, %284 : vector<1x256xf32>
    %286 = vector.extract_strided_slice %171 {offsets = [0, 0], sizes = [1, 256], strides = [1, 1]} : vector<4x256xf32> to vector<1x256xf32>
    %c24_34 = arith.constant 24 : index
    %287 = memref.load %arg3[%c24_34] : memref<32xf32, #tpu.memory_space<smem>>
    %288 = vector.broadcast %287 : f32 to vector<1x256xf32>
    %289 = arith.mulf %286, %288 : vector<1x256xf32>
    %290 = vector.extract_strided_slice %171 {offsets = [1, 0], sizes = [1, 256], strides = [1, 1]} : vector<4x256xf32> to vector<1x256xf32>
    %c25_35 = arith.constant 25 : index
    %291 = memref.load %arg3[%c25_35] : memref<32xf32, #tpu.memory_space<smem>>
    %292 = vector.broadcast %291 : f32 to vector<1x256xf32>
    %293 = arith.mulf %290, %292 : vector<1x256xf32>
    %294 = arith.addf %289, %293 : vector<1x256xf32>
    %295 = vector.extract_strided_slice %171 {offsets = [2, 0], sizes = [1, 256], strides = [1, 1]} : vector<4x256xf32> to vector<1x256xf32>
    %c26_36 = arith.constant 26 : index
    %296 = memref.load %arg3[%c26_36] : memref<32xf32, #tpu.memory_space<smem>>
    %297 = vector.broadcast %296 : f32 to vector<1x256xf32>
    %298 = arith.mulf %295, %297 : vector<1x256xf32>
    %299 = arith.addf %294, %298 : vector<1x256xf32>
    %300 = vector.extract_strided_slice %171 {offsets = [3, 0], sizes = [1, 256], strides = [1, 1]} : vector<4x256xf32> to vector<1x256xf32>
    %c27_37 = arith.constant 27 : index
    %301 = memref.load %arg3[%c27_37] : memref<32xf32, #tpu.memory_space<smem>>
    %302 = vector.broadcast %301 : f32 to vector<1x256xf32>
    %303 = arith.mulf %300, %302 : vector<1x256xf32>
    %304 = arith.addf %299, %303 : vector<1x256xf32>
    %305 = vector.extract_strided_slice %171 {offsets = [0, 0], sizes = [1, 256], strides = [1, 1]} : vector<4x256xf32> to vector<1x256xf32>
    %c28_38 = arith.constant 28 : index
    %306 = memref.load %arg3[%c28_38] : memref<32xf32, #tpu.memory_space<smem>>
    %307 = vector.broadcast %306 : f32 to vector<1x256xf32>
    %308 = arith.mulf %305, %307 : vector<1x256xf32>
    %309 = vector.extract_strided_slice %171 {offsets = [1, 0], sizes = [1, 256], strides = [1, 1]} : vector<4x256xf32> to vector<1x256xf32>
    %c29_39 = arith.constant 29 : index
    %310 = memref.load %arg3[%c29_39] : memref<32xf32, #tpu.memory_space<smem>>
    %311 = vector.broadcast %310 : f32 to vector<1x256xf32>
    %312 = arith.mulf %309, %311 : vector<1x256xf32>
    %313 = arith.addf %308, %312 : vector<1x256xf32>
    %314 = vector.extract_strided_slice %171 {offsets = [2, 0], sizes = [1, 256], strides = [1, 1]} : vector<4x256xf32> to vector<1x256xf32>
    %c30_40 = arith.constant 30 : index
    %315 = memref.load %arg3[%c30_40] : memref<32xf32, #tpu.memory_space<smem>>
    %316 = vector.broadcast %315 : f32 to vector<1x256xf32>
    %317 = arith.mulf %314, %316 : vector<1x256xf32>
    %318 = arith.addf %313, %317 : vector<1x256xf32>
    %319 = vector.extract_strided_slice %171 {offsets = [3, 0], sizes = [1, 256], strides = [1, 1]} : vector<4x256xf32> to vector<1x256xf32>
    %c31_41 = arith.constant 31 : index
    %320 = memref.load %arg3[%c31_41] : memref<32xf32, #tpu.memory_space<smem>>
    %321 = vector.broadcast %320 : f32 to vector<1x256xf32>
    %322 = arith.mulf %319, %321 : vector<1x256xf32>
    %323 = arith.addf %318, %322 : vector<1x256xf32>
    %324 = tpu.concatenate %190, %209, %228, %247, %266, %285, %304, %323 in 0 : vector<1x256xf32>, vector<1x256xf32>, vector<1x256xf32>, vector<1x256xf32>, vector<1x256xf32>, vector<1x256xf32>, vector<1x256xf32>, vector<1x256xf32> -> vector<8x256xf32>
    %c1_42 = arith.constant 1 : index
    %c0_43 = arith.constant 0 : index
    %c0_44 = arith.constant 0 : index
    %325 = vector.load %arg4[%c1_42, %c0_43, %c0_44] : memref<2x8x256xf32, #tpu.memory_space<vmem>>, vector<1x8x256xf32>
    %326 = vector.shape_cast %325 : vector<1x8x256xf32> to vector<8x256xf32>
    %327 = vector.shape_cast %324 : vector<8x256xf32> to vector<1x8x256xf32>
    tpu.vector_store %arg4[%c1_42, %c0_43, %c0_44], %327 {strides = array<i32>} : memref<2x8x256xf32, #tpu.memory_space<vmem>>, vector<1x8x256xf32>,
    return
  }
  func.func @transform_0(%arg0: i32, %arg1: i32) -> (i32, i32, i32) {
    %c0_i32 = arith.constant 0 : i32
    %c0_i32_0 = arith.constant 0 : i32
    return %arg0, %c0_i32, %arg1 : i32, i32, i32
  }
  func.func @transform_1(%arg0: i32, %arg1: i32) -> i32 {
    %c0_i32 = arith.constant 0 : i32
    %c0_i32_0 = arith.constant 0 : i32
    return %c0_i32 : i32
  }
  func.func @transform_2(%arg0: i32, %arg1: i32) -> (i32, i32, i32) {
    %c0_i32 = arith.constant 0 : i32
    %c0_i32_0 = arith.constant 0 : i32
    return %arg0, %c0_i32, %arg1 : i32, i32, i32
  }
}

</mosaic_0001>

<bundles_post_ra>
// kernel: tpu_custom_call.1
= control target key start
LH: loop header
LB: loop body
LE: loop exit
PB: predicated region body
PF: predicated region fallthrough
CT: control target
= control target key end

     0   :  { %s1333_s0 = inlined_call_operand.hbm [shape: f32[2,4,256], index: 0, kind: input, shape index: {}]   ;;  %s1334_s1 = inlined_call_operand.hbm [shape: f32[32], index: 1, kind: input, shape index: {}]   ;;  %s1335_s2 = inlined_call_operand.hbm [shape: f32[2,8,256], index: 2, kind: output, shape index: {}]  }
   0x1   :  { %1346 = sst [smem:[#allocation15_spill]] %s1335_s2 }
   0x2   :  { %7 = vsyncpa [#allocation3], 0 }
   0x3   :  { %8 = vsyncpa [#allocation5], 0 }
   0x4   :  { %9 = vsyncpa [#allocation4], 0  ;;  %s14_s11 = sshll.u32 %s1333_s0, 4  ;;  %s901_s12 = smov [#allocation2]   ;;  %s15_s11 = int_to_ptr.hbm [resolvable:$true] %s14_s11 }
   0x5   :  { %s16_s13 = sshll.u32 %s901_s12, 4  ;;  %s28_s16 = sshll.u32 %s1334_s1, 4  ;;  %s17_s13 = int_to_ptr.vmem [resolvable:$true] %s16_s13  ;;  %s29_s16 = int_to_ptr.hbm [resolvable:$true] %s28_s16 }
   0x6   :  { %s902_s17 = smov 128   ;;  %s903_s18 = smov 8  }
   0x7   :  { %22 = dma.hbm_to_vmem [thread:$0]  %s15_s11, 256, %s17_s13, [#allocation3], %s902_s17, %s902_s17, %s903_s18  }
   0x8   :  { %s904_s19 = smov [#allocation6]  }
   0x9   :  { %31 = dma.hbm_to_smem %s29_s16, 16, %s904_s19, [#allocation5]  }
   0xa   :  { %895 = dma.done.wait [#allocation3], 256  }
   0xb   :  { %896 = vsyncadd [#allocation3], 4294967040 }
   0xc   :  { %897 = dma.done.wait [#allocation5], 16  }
   0xd   :  { %898 = vsyncadd [#allocation5], 4294967280 }
   0xe   :  { %40 = sfence }
   0xf   :  { %v929_v0 = vld [vmem:[#allocation2] sm:$0xff]  ;;  %v933_v2 = vld [vmem:[#allocation2 + $0x8] sm:$0xff]  ;;  %s937_s0 = sld [smem:[#allocation6]]  ;;  %vm49_vm0 = vcmask 1043456   ;;  %vm346_vm7 = vcmask 1040384   ;;  %vm349_vm8 = vcmask 1041408  }
  0x10   :  { %v42_v1 = vmul.f32 %v929_v0, %v929_v0  ;;  %v370_v3 = vmul.f32 %v933_v2, %v933_v2  ;;  %s939_s1 = sld [smem:[#allocation6 + $0x1]]  ;;  %vm352_vm9 = vcmask 1042432   ;;  %vm357_vm10 = vcmask 1044480  }
  0x11   :  { %s941_s20 = sld [smem:[#allocation6 + $0x2]]  ;;  %vm360_vm12 = vcmask 1045504   ;;  %vm363_vm13 = vcmask 1046528  }
  0x12   :  { %44 = vst [vmem:[#allocation1] ss:$2 sm:$0xff] %v42_v1  ;;  %s945_s21 = sld [smem:[#allocation6 + $0x3]] }
  0x13   :  { %s947_s22 = sld [smem:[#allocation6 + $0x4]] }
  0x14   :  { %s949_s23 = sld [smem:[#allocation6 + $0x5]] }
  0x15   :  { %s951_s24 = sld [smem:[#allocation6 + $0x6]]  ;;  %v91_v43 = vstv %s937_s0 }
  0x16   :  { %s953_s25 = sld [smem:[#allocation6 + $0x7]]  ;;  %v94_v44 = vstv %s939_s1 }
  0x17   :  { %s955_s26 = sld [smem:[#allocation6 + $0x8]]  ;;  %v102_v45 = vstv %s941_s20 }
  0x18   :  { %s957_s27 = sld [smem:[#allocation6 + $0x9]]  ;;  %v110_v47 = vstv %s945_s21 }
  0x19   :  { %v45_v4 = vld.sshfl [vmem:[#allocation1] sm:$0xff pattern:$0x75316420]  ;;  %v46_v5 = vld.sshfl [vmem:[#allocation1 + $0x8] sm:$0xff pattern:$0x75316420]  ;;  %v118_v48 = vstv %s947_s22 }
  0x1a   :  { %372 = vst [vmem:[#allocation1] ss:$2 sm:$0xff] %v370_v3  ;;  %v50_v6 = vsel %vm49_vm0, %v45_v4, 0.0  ;;  %v57_v7 = vsel %vm49_vm0, %v46_v5, 0.0  ;;  %1347 = sst [smem:[#allocation11_spill]] %s947_s22  ;;  %v121_v50 = vstv %s949_s23 }
  0x1b   :  { %v51_v8 = vrot.slane %v50_v6, 4  ;;  %v58_v9 = vrot.slane %v57_v7, 4  ;;  %s959_s28 = sld [smem:[#allocation6 + $0xa]]  ;;  %v129_v51 = vstv %s951_s24  ;;  %s906_s24 = smov 256  }
  0x1c   :  { %s961_s29 = sld [smem:[#allocation6 + $0xb]]  ;;  %v137_v52 = vstv %s953_s25  ;;  %s907_s25 = smov 16  }
  0x1d   :  { %v52_v10 = vadd.f32 %v51_v8, %v50_v6  ;;  %v59_v11 = vadd.f32 %v58_v9, %v57_v7  ;;  %s964_s30 = sld [smem:[#allocation6 + $0xc]]  ;;  %v145_v54 = vstv %s955_s26 }
  0x1e   :  { %s966_s3 = sld [smem:[#allocation6 + $0xd]]  ;;  %v148_v55 = vstv %s957_s27 }
  0x1f   :  { %v53_v12 = vrot.slane %v52_v10, 2  ;;  %v60_v13 = vrot.slane %v59_v11, 2  ;;  %s973_s4 = sld [smem:[#allocation6 + $0xe]] }
  0x20   :  { %s975_s5 = sld [smem:[#allocation6 + $0xf]] }
  0x21   :  { %v54_v14 = vadd.f32 %v53_v12, %v52_v10  ;;  %v61_v15 = vadd.f32 %v60_v13, %v59_v11  ;;  %v373_v16 = vld.sshfl [vmem:[#allocation1] sm:$0xff pattern:$0x75316420]  ;;  %v374_v17 = vld.sshfl [vmem:[#allocation1 + $0x8] sm:$0xff pattern:$0x75316420]  ;;  %v156_v57 = vstv %s959_s28 }
  0x22   :  { %v377_v18 = vsel %vm49_vm0, %v373_v16, 0.0  ;;  %v384_v22 = vsel %vm49_vm0, %v374_v17, 0.0  ;;  %s978_s6 = sld [smem:[#allocation6 + $0x10]]  ;;  %v164_v58 = vstv %s961_s29 }
  0x23   :  { %v55_v19 = vrot.slane %v54_v14, 1  ;;  %v62_v20 = vrot.slane %v61_v15, 1  ;;  %v378_v21 = vrot.slane %v377_v18, 4  ;;  %v385_v26 = vrot.slane %v384_v22, 4  ;;  %s981_s7 = sld [smem:[#allocation6 + $0x11]] }
  0x24   :  { %1348 = sst [smem:[#allocation12_spill]] %s966_s3  ;;  %v172_v59 = vstv %s964_s30  ;;  %v175_v63 = vstv %s966_s3 }
  0x25   :  { %v969_v23 = vadd.f32 %v55_v19, %v54_v14  ;;  %v971_v24 = vadd.f32 %v62_v20, %v61_v15  ;;  %v379_v25 = vadd.f32 %v378_v21, %v377_v18  ;;  %v386_v28 = vadd.f32 %v385_v26, %v384_v22  ;;  %s983_s8 = sld [smem:[#allocation6 + $0x12]] }
  0x26   :  { %s985_s9 = sld [smem:[#allocation6 + $0x13]]  ;;  %v183_v1 = vstv %s973_s4  ;;  %v191_v3 = vstv %s975_s5 }
  0x27   :  { %827 = vrsqrt.f32 %v969_v23  ;;  %v380_v27 = vrot.slane %v379_v25, 2  ;;  %v387_v30 = vrot.slane %v386_v28, 2  ;;  %s987_s10 = sld [smem:[#allocation6 + $0x14]]  ;;  %vm80_vm2 = vweird.f32 %v971_v24 }
  0x28   :  { %829 = vrsqrt.f32 %v971_v24  ;;  %s989_s11 = sld [smem:[#allocation6 + $0x15]]  ;;  %v199_v4 = vstv %s978_s6  ;;  %vm70_vm5 = vweird.f32 %v969_v23 }
  0x29   :  { %v381_v29 = vadd.f32 %v380_v27, %v379_v25  ;;  %v388_v32 = vadd.f32 %v387_v30, %v386_v28  ;;  %s993_s12 = sld [smem:[#allocation6 + $0x16]]  ;;  %v202_v7 = vstv %s981_s7 }
  0x2a   :  { %s997_s13 = sld [smem:[#allocation6 + $0x17]] }
  0x2b   :  { %v382_v31 = vrot.slane %v381_v29, 1  ;;  %s1002_s14 = sld [smem:[#allocation6 + $0x18]]  ;;  %v389_v38 = vrot.slane %v388_v32, 1  ;;  %v210_v8 = vstv %s983_s8 }
  0x2c   :  { %s1005_s15 = sld [smem:[#allocation6 + $0x19]]  ;;  %v218_v10 = vstv %s985_s9 }
  0x2d   :  { %v991_v33 = vpop.eup %827  ;;  %v999_v36 = vadd.f32 %v382_v31, %v381_v29  ;;  %s1008_s16 = sld [smem:[#allocation6 + $0x1a]]  ;;  %v1010_v41 = vadd.f32 %v389_v38, %v388_v32  ;;  %v226_v11 = vstv %s987_s10 }
  0x2e   :  { %v830_v34 = vpop.eup %829  ;;  %v65_v35 = vmul.f32 %v991_v33, %v969_v23  ;;  %s1015_s17 = sld [smem:[#allocation6 + $0x1b]]  ;;  %vm71_vm3 = vweird.f32 %v991_v33  ;;  %v229_v14 = vstv %s989_s11 }
  0x2f   :  { %1349 = sst [smem:[#allocation13_spill]] %s993_s12  ;;  %v75_v37 = vmul.f32 %v830_v34, %v971_v24  ;;  %831 = vrsqrt.f32 %v999_v36  ;;  %vm81_vm1 = vweird.f32 %v830_v34  ;;  %vm72_vm6 = vmor %vm70_vm5, %vm71_vm3  ;;  %v237_v15 = vstv %s993_s12 }
  0x30   :  { %v66_v39 = vmul.f32 %v991_v33, %v65_v35  ;;  %s1019_s18 = sld [smem:[#allocation6 + $0x1c]]  ;;  %833 = vrsqrt.f32 %v1010_v41  ;;  %vm82_vm4 = vmor %vm80_vm2, %vm81_vm1  ;;  %v245_v18 = vstv %s997_s13  ;;  %vm407_vm15 = vweird.f32 %v1010_v41 }
  0x31   :  { %v76_v40 = vmul.f32 %v830_v34, %v75_v37  ;;  %s1025_s19 = sld [smem:[#allocation6 + $0x1d]]  ;;  %v253_v19 = vstv %s1002_s14  ;;  %vm397_vm2 = vweird.f32 %v999_v36 }
  0x32   :  { %v67_v42 = vmul.f32 0.5, %v66_v39  ;;  %s1029_s2 = sld [smem:[#allocation6 + $0x1e]]  ;;  %v256_v20 = vstv %s1005_s15 }
  0x33   :  { %v77_v46 = vmul.f32 0.5, %v76_v40  ;;  %s1037_s22 = sld [smem:[#allocation6 + $0x1f]]  ;;  %v264_v22 = vstv %s1008_s16 }
  0x34   :  { %v68_v49 = vsub.f32 1.5, %v67_v42  ;;  %v1344_v23 = vstv %s1015_s17 }
  0x35   :  { %v78_v53 = vsub.f32 1.5, %v77_v46  ;;  %v1031_v56 = vpop.eup %831 }
  0x36   :  { %v69_v60 = vmul.f32 %v991_v33, %v68_v49  ;;  %v392_v62 = vmul.f32 %v1031_v56, %v999_v36  ;;  %v1047_v5 = vpop.eup %833  ;;  %v1343_v24 = vstv %s1019_s18  ;;  %vm398_vm14 = vweird.f32 %v1031_v56 }
  0x37   :  { %v79_v61 = vmul.f32 %v830_v34, %v78_v53  ;;  %v402_v16 = vmul.f32 %v1047_v5, %v1010_v41  ;;  %v283_v25 = vstv %s1025_s19  ;;  %vm408_vm11 = vweird.f32 %v1047_v5  ;;  %vm399_vm3 = vmor %vm397_vm2, %vm398_vm14 }
  0x38   :  { %v393_v12 = vmul.f32 %v1031_v56, %v392_v62  ;;  %v73_v13 = vsel %vm72_vm6, %v991_v33, %v69_v60  ;;  %v1342_v26 = vstv %s1029_s2  ;;  %vm409_vm1 = vmor %vm407_vm15, %vm408_vm11 }
  0x39   :  { %1350 = sst [smem:[#allocation14_spill]] %s1037_s22  ;;  %v83_v6 = vsel %vm82_vm4, %v830_v34, %v79_v61  ;;  %v1341_v27 = vstv %s1037_s22  ;;  %v1085_v31 = vmul.f32 %v1047_v5, %v402_v16 }
  0x3a   :  { %v86_v9 = vrot.slane %v83_v6, 4  ;;  %v1073_v28 = vmul.f32 0.5, %v393_v12  ;;  %s1354_s0 = sld [smem:[#allocation14_spill]] }
  0x3b   :  { %s1359_s22 = sld [smem:[#allocation15_spill]] }
  0x3c   :  { %v87_v17 = vsel %vm49_vm0, %v73_v13, %v86_v9 }
  0x3d   :  { %v1065_v21 = vmul.f32 %v87_v17, %v929_v0 }
  0x3f   :  { %v95_v29 = vmul.f32 %v94_v44, %v1065_v21  ;;  %v103_v30 = vmul.f32 %v102_v45, %v1065_v21  ;;  %v111_v0 = vmul.f32 %v110_v47, %v1065_v21  ;;  %v92_v32 = vmul.f32 %v91_v43, %v1065_v21 }
  0x40   :  { %v122_v33 = vmul.f32 %v121_v50, %v1065_v21  ;;  %v130_v34 = vmul.f32 %v129_v51, %v1065_v21  ;;  %v138_v35 = vmul.f32 %v137_v52, %v1065_v21  ;;  %v119_v40 = vmul.f32 %v118_v48, %v1065_v21 }
  0x41   :  { %v711_v37 = vrot.slane %v95_v29, 9  ;;  %v713_v38 = vrot.slane %v103_v30, 10  ;;  %v715_v39 = vrot.slane %v111_v0, 11  ;;  %v146_v49 = vmul.f32 %v145_v54, %v1065_v21  ;;  %s696_s23 = sshll.u32 %s1359_s22, 4  ;;  %s697_s23 = int_to_ptr.hbm [resolvable:$true] %s696_s23 }
  0x42   :  { %v718_v42 = vrot.slane %v122_v33, 9  ;;  %v720_v46 = vrot.slane %v130_v34, 10  ;;  %v149_v53 = vmul.f32 %v148_v55, %v1065_v21  ;;  %v722_v61 = vrot.slane %v138_v35, 11 }
  0x43   :  { %v100_v60 = vadd.f32 %v711_v37, %v92_v32  ;;  %v157_v62 = vmul.f32 %v156_v57, %v1065_v21  ;;  %v165_v6 = vmul.f32 %v164_v58, %v1065_v21  ;;  %v176_v13 = vmul.f32 %v175_v63, %v1065_v21 }
  0x44   :  { %v127_v9 = vadd.f32 %v718_v42, %v119_v40  ;;  %v725_v12 = vrot.slane %v149_v53, 9  ;;  %v184_v16 = vmul.f32 %v183_v1, %v1065_v21  ;;  %v173_v30 = vmul.f32 %v172_v59, %v1065_v21 }
  0x45   :  { %v108_v17 = vadd.f32 %v713_v38, %v100_v60  ;;  %v727_v29 = vrot.slane %v157_v62, 10  ;;  %v192_v0 = vmul.f32 %v191_v3, %v1065_v21  ;;  %v729_v34 = vrot.slane %v165_v6, 11 }
  0x46   :  { %v135_v32 = vadd.f32 %v720_v46, %v127_v9  ;;  %v154_v33 = vadd.f32 %v725_v12, %v146_v49  ;;  %v732_v35 = vrot.slane %v176_v13, 9  ;;  %v734_v40 = vrot.slane %v184_v16, 10 }
  0x47   :  { %v1126_v37 = vadd.f32 %v715_v39, %v108_v17  ;;  %v736_v42 = vrot.slane %v192_v0, 11  ;;  %v203_v38 = vmul.f32 %v202_v7, %v1065_v21  ;;  %v200_v62 = vmul.f32 %v199_v4, %v1065_v21 }
  0x48   :  { %v162_v53 = vadd.f32 %v727_v29, %v154_v33  ;;  %v181_v60 = vadd.f32 %v732_v35, %v173_v30  ;;  %v211_v46 = vmul.f32 %v210_v8, %v1065_v21  ;;  %v1137_v49 = vadd.f32 %v722_v61, %v135_v32 }
  0x49   :  { %v739_v6 = vrot.slane %v203_v38, 9  ;;  %v219_v39 = vmul.f32 %v218_v10, %v1065_v21  ;;  %v230_v9 = vmul.f32 %v229_v14, %v1065_v21  ;;  %v227_v16 = vmul.f32 %v226_v11, %v1065_v21 }
  0x4a   :  { %v1145_v12 = vadd.f32 %v729_v34, %v162_v53  ;;  %v189_v13 = vadd.f32 %v734_v40, %v181_v60  ;;  %v238_v61 = vmul.f32 %v237_v15, %v1065_v21  ;;  %v741_v29 = vrot.slane %v211_v46, 10 }
  0x4b   :  { %v208_v17 = vadd.f32 %v739_v6, %v200_v62  ;;  %v746_v30 = vrot.slane %v230_v9, 9  ;;  %v246_v0 = vmul.f32 %v245_v18, %v1065_v21  ;;  %v743_v33 = vrot.slane %v219_v39, 11 }
  0x4c   :  { %v197_v32 = vadd.f32 %v736_v42, %v189_v13  ;;  %v748_v34 = vrot.slane %v238_v61, 10  ;;  %v257_v35 = vmul.f32 %v256_v20, %v1065_v21  ;;  %v254_v53 = vmul.f32 %v253_v19, %v1065_v21 }
  0x4d   :  { %v216_v40 = vadd.f32 %v741_v29, %v208_v17  ;;  %v235_v38 = vadd.f32 %v746_v30, %v227_v16  ;;  %v265_v60 = vmul.f32 %v264_v22, %v1065_v21  ;;  %v750_v62 = vrot.slane %v246_v0, 11 }
  0x4e   :  { %v753_v42 = vrot.slane %v257_v35, 9  ;;  %v273_v46 = vmul.f32 %v1344_v23, %v1065_v21  ;;  %v284_v6 = vmul.f32 %v283_v25, %v1065_v21  ;;  %v281_v13 = vmul.f32 %v1343_v24, %v1065_v21 }
  0x4f   :  { %v224_v39 = vadd.f32 %v743_v33, %v216_v40  ;;  %v243_v9 = vadd.f32 %v748_v34, %v235_v38  ;;  %v292_v16 = vmul.f32 %v1342_v26, %v1065_v21  ;;  %v755_v17 = vrot.slane %v265_v60, 10 }
  0x50   :  { %v262_v61 = vadd.f32 %v753_v42, %v254_v53  ;;  %v760_v29 = vrot.slane %v284_v6, 9  ;;  %v300_v30 = vmul.f32 %v1341_v27, %v1065_v21  ;;  %v757_v35 = vrot.slane %v273_v46, 11 }
  0x51   :  { %v251_v0 = vadd.f32 %v750_v62, %v243_v9  ;;  %v762_v33 = vrot.slane %v292_v16, 10  ;;  %v307_v34 = vperm.slane %v1126_v37, 0  ;;  %v308_v53 = vperm.slane %v1126_v37, 4 }
  0x52   :  { %v270_v40 = vadd.f32 %v755_v17, %v262_v61  ;;  %v289_v38 = vadd.f32 %v760_v29, %v281_v13  ;;  %v312_v60 = vperm.slane %v1137_v49, 0  ;;  %v313_v42 = vperm.slane %v1137_v49, 4 }
  0x53   :  { %v317_v21 = vperm.slane %v1145_v12, 0  ;;  %v318_v62 = vperm.slane %v1145_v12, 4  ;;  %v404_v46 = vmul.f32 0.5, %v1085_v31  ;;  %v764_v16 = vrot.slane %v300_v30, 11 }
  0x54   :  { %v278_v6 = vadd.f32 %v757_v35, %v270_v40  ;;  %v297_v9 = vadd.f32 %v762_v33, %v289_v38  ;;  %v395_v27 = vsub.f32 1.5, %v1073_v28  ;;  %v322_v26 = vperm.slane %v197_v32, 0 }
  0x55   :  { %v323_v61 = vperm.slane %v197_v32, 4  ;;  %v327_v13 = vperm.slane %v224_v39, 0  ;;  %v347_v37 = vsel %vm346_vm7, %v307_v34, %v312_v60  ;;  %v328_v29 = vperm.slane %v224_v39, 4 }
  0x56   :  { %v305_v17 = vadd.f32 %v764_v16, %v297_v9  ;;  %v332_v24 = vperm.slane %v251_v0, 0  ;;  %v348_v49 = vsel %vm346_vm7, %v308_v53, %v313_v42  ;;  %v333_v23 = vperm.slane %v251_v0, 4 }
  0x57   :  { %v350_v12 = vsel %vm349_vm8, %v347_v37, %v317_v21  ;;  %v351_v31 = vsel %vm349_vm8, %v348_v49, %v318_v62  ;;  %v405_v35 = vsub.f32 1.5, %v404_v46  ;;  %v337_v33 = vperm.slane %v278_v6, 0 }
  0x58   :  { %v338_v30 = vperm.slane %v278_v6, 4  ;;  %v353_v28 = vsel %vm352_vm9, %v350_v12, %v322_v26  ;;  %v354_v32 = vsel %vm352_vm9, %v351_v31, %v323_v61  ;;  %v396_v39 = vmul.f32 %v1031_v56, %v395_v27 }
  0x59   :  { %v355_v40 = vsel %vm49_vm0, %v353_v28, %v327_v13  ;;  %v356_v34 = vsel %vm49_vm0, %v354_v32, %v328_v29  ;;  %v406_v38 = vmul.f32 %v1047_v5, %v405_v35  ;;  %v342_v0 = vperm.slane %v305_v17, 0 }
  0x5a   :  { %v343_v53 = vperm.slane %v305_v17, 4  ;;  %v358_v60 = vsel %vm357_vm10, %v355_v40, %v332_v24  ;;  %v359_v42 = vsel %vm357_vm10, %v356_v34, %v333_v23  ;;  %v400_v62 = vsel %vm399_vm3, %v1031_v56, %v396_v39 }
  0x5b   :  { %v361_v26 = vsel %vm360_vm12, %v358_v60, %v337_v33  ;;  %v362_v27 = vsel %vm360_vm12, %v359_v42, %v338_v30  ;;  %v410_v24 = vsel %vm409_vm1, %v1047_v5, %v406_v38 }
  0x5c   :  { %v364_v23 = vsel %vm363_vm13, %v361_v26, %v342_v0  ;;  %v365_v21 = vsel %vm363_vm13, %v362_v27, %v343_v53  ;;  %v413_v41 = vrot.slane %v410_v24, 4 }
  0x5d   :  { %366 = vst [vmem:[#allocation7] sm:$0xff] %v364_v23 }
  0x5e   :  { %367 = vst [vmem:[#allocation7 + $0x8] sm:$0xff] %v365_v21  ;;  %v414_v36 = vsel %vm49_vm0, %v400_v62, %v413_v41 }
  0x5f   :  { %v1218_v5 = vmul.f32 %v414_v36, %v933_v2 }
  0x61   :  { %v422_v46 = vmul.f32 %v1218_v5, %v94_v44  ;;  %v430_v6 = vmul.f32 %v1218_v5, %v102_v45  ;;  %v419_v9 = vmul.f32 %v1218_v5, %v91_v43  ;;  %v449_v56 = vmul.f32 %v1218_v5, %v121_v50 }
  0x62   :  { %v457_v16 = vmul.f32 %v1218_v5, %v129_v51  ;;  %v438_v61 = vmul.f32 %v1218_v5, %v110_v47  ;;  %v446_v44 = vmul.f32 %v1218_v5, %v118_v48  ;;  %v465_v45 = vmul.f32 %v1218_v5, %v137_v52 }
  0x63   :  { %v766_v2 = vrot.slane %v422_v46, 9  ;;  %v768_v43 = vrot.slane %v430_v6, 10  ;;  %v773_v13 = vrot.slane %v449_v56, 9  ;;  %v473_v50 = vmul.f32 %v1218_v5, %v145_v54 }
  0x64   :  { %v476_v51 = vmul.f32 %v1218_v5, %v148_v55  ;;  %v775_v17 = vrot.slane %v457_v16, 10  ;;  %v484_v47 = vmul.f32 %v1218_v5, %v156_v57  ;;  %v492_v48 = vmul.f32 %v1218_v5, %v164_v58 }
  0x65   :  { %v427_v37 = vadd.f32 %v766_v2, %v419_v9  ;;  %v454_v52 = vadd.f32 %v773_v13, %v446_v44  ;;  %v503_v49 = vmul.f32 %v1218_v5, %v175_v63  ;;  %v511_v54 = vmul.f32 %v1218_v5, %v183_v1 }
  0x66   :  { %v780_v29 = vrot.slane %v476_v51, 9  ;;  %v770_v12 = vrot.slane %v438_v61, 11  ;;  %v782_v31 = vrot.slane %v484_v47, 10  ;;  %v500_v57 = vmul.f32 %v1218_v5, %v172_v59 }
  0x67   :  { %v435_v55 = vadd.f32 %v768_v43, %v427_v37  ;;  %v462_v58 = vadd.f32 %v775_v17, %v454_v52  ;;  %v787_v33 = vrot.slane %v503_v49, 9  ;;  %v519_v30 = vmul.f32 %v1218_v5, %v191_v3 }
  0x68   :  { %v481_v35 = vadd.f32 %v780_v29, %v473_v50  ;;  %v777_v63 = vrot.slane %v465_v45, 11  ;;  %v784_v28 = vrot.slane %v492_v48, 11  ;;  %v789_v1 = vrot.slane %v511_v54, 10 }
  0x69   :  { %v530_v32 = vmul.f32 %v1218_v5, %v202_v7  ;;  %v443_v40 = vadd.f32 %v770_v12, %v435_v55  ;;  %v508_v39 = vadd.f32 %v787_v33, %v500_v57  ;;  %v538_v59 = vmul.f32 %v1218_v5, %v210_v8 }
  0x6a   :  { %v489_v34 = vadd.f32 %v782_v31, %v481_v35  ;;  %v527_v38 = vmul.f32 %v1218_v5, %v199_v4  ;;  %v546_v0 = vmul.f32 %v1218_v5, %v218_v10  ;;  %v557_v53 = vmul.f32 %v1218_v5, %v229_v14 }
  0x6b   :  { %v794_v3 = vrot.slane %v530_v32, 9  ;;  %v470_v7 = vadd.f32 %v777_v63, %v462_v58  ;;  %v516_v60 = vadd.f32 %v789_v1, %v508_v39  ;;  %v791_v42 = vrot.slane %v519_v30, 11 }
  0x6c   :  { %v565_v26 = vmul.f32 %v1218_v5, %v237_v15  ;;  %v796_v27 = vrot.slane %v538_v59, 10  ;;  %v554_v4 = vmul.f32 %v1218_v5, %v226_v11  ;;  %v801_v10 = vrot.slane %v557_v53, 9 }
  0x6d   :  { %v535_v8 = vadd.f32 %v794_v3, %v527_v38  ;;  %v497_v24 = vadd.f32 %v784_v28, %v489_v34  ;;  %v798_v14 = vrot.slane %v546_v0, 11  ;;  %v573_v23 = vmul.f32 %v1218_v5, %v245_v18 }
  0x6e   :  { %v584_v21 = vmul.f32 %v1218_v5, %v256_v20  ;;  %v562_v41 = vadd.f32 %v801_v10, %v554_v4  ;;  %v803_v62 = vrot.slane %v565_v26, 10  ;;  %v592_v36 = vmul.f32 %v1218_v5, %v264_v22 }
  0x6f   :  { %v543_v15 = vadd.f32 %v796_v27, %v535_v8  ;;  %v524_v46 = vadd.f32 %v791_v42, %v516_v60  ;;  %v581_v11 = vmul.f32 %v1218_v5, %v253_v19  ;;  %v611_v9 = vmul.f32 %v1218_v5, %v283_v25 }
  0x70   :  { %v808_v6 = vrot.slane %v584_v21, 9  ;;  %v570_v56 = vadd.f32 %v803_v62, %v562_v41  ;;  %v1355_v18 = vstv %s1015_s17  ;;  %v1356_v20 = vstv %s1019_s18 }
  0x71   :  { %v600_v16 = vmul.f32 %v1218_v5, %v1355_v18  ;;  %v608_v2 = vmul.f32 %v1218_v5, %v1356_v20  ;;  %v1357_v61 = vstv %s1029_s2  ;;  %v810_v22 = vrot.slane %v592_v36, 10  ;;  %s905_s2 = smov [#allocation7]  }
  0x72   :  { %v619_v44 = vmul.f32 %v1218_v5, %v1357_v61  ;;  %v589_v45 = vadd.f32 %v808_v6, %v581_v11  ;;  %v815_v43 = vrot.slane %v611_v9, 9  ;;  %v1358_v13 = vstv %s1354_s0  ;;  %s694_s1 = sshll.u32 %s905_s2, 4  ;;  %s695_s1 = int_to_ptr.vmem [resolvable:$true] %s694_s1 }
  0x73   :  { %v627_v19 = vmul.f32 %v1218_v5, %v1358_v13  ;;  %v551_v50 = vadd.f32 %v798_v14, %v543_v15  ;;  %v805_v51 = vrot.slane %v573_v23, 11  ;;  %v634_v25 = vperm.slane %v443_v40, 0 }
  0x74   :  { %v817_v37 = vrot.slane %v619_v44, 10  ;;  %v597_v17 = vadd.f32 %v810_v22, %v589_v45  ;;  %v616_v47 = vadd.f32 %v815_v43, %v608_v2  ;;  %v635_v48 = vperm.slane %v443_v40, 4 }
  0x75   :  { %v639_v52 = vperm.slane %v470_v7, 0  ;;  %v812_v29 = vrot.slane %v600_v16, 11  ;;  %v640_v49 = vperm.slane %v470_v7, 4  ;;  %v644_v54 = vperm.slane %v497_v24, 0 }
  0x76   :  { %v645_v55 = vperm.slane %v497_v24, 4  ;;  %v578_v12 = vadd.f32 %v805_v51, %v570_v56  ;;  %v624_v31 = vadd.f32 %v817_v37, %v616_v47  ;;  %v819_v57 = vrot.slane %v627_v19, 11 }
  0x77   :  { %v605_v58 = vadd.f32 %v812_v29, %v597_v17  ;;  %v673_v35 = vsel %vm346_vm7, %v634_v25, %v639_v52  ;;  %v649_v5 = vperm.slane %v524_v46, 0  ;;  %v650_v30 = vperm.slane %v524_v46, 4 }
  0x78   :  { %v632_v33 = vadd.f32 %v819_v57, %v624_v31  ;;  %v674_v63 = vsel %vm346_vm7, %v635_v48, %v640_v49  ;;  %v654_v28 = vperm.slane %v551_v50, 0  ;;  %v655_v1 = vperm.slane %v551_v50, 4 }
  0x79   :  { %v675_v32 = vsel %vm349_vm8, %v673_v35, %v644_v54  ;;  %v676_v40 = vsel %vm349_vm8, %v674_v63, %v645_v55  ;;  %v659_v34 = vperm.slane %v578_v12, 0  ;;  %v660_v39 = vperm.slane %v578_v12, 4 }
  0x7a   :  { %v677_v59 = vsel %vm352_vm9, %v675_v32, %v649_v5  ;;  %v678_v38 = vsel %vm352_vm9, %v676_v40, %v650_v30  ;;  %v664_v3 = vperm.slane %v605_v58, 0  ;;  %v665_v0 = vperm.slane %v605_v58, 4 }
  0x7b   :  { %v679_v53 = vsel %vm49_vm0, %v677_v59, %v654_v28  ;;  %v680_v7 = vsel %vm49_vm0, %v678_v38, %v655_v1  ;;  %v669_v60 = vperm.slane %v632_v33, 0  ;;  %v670_v42 = vperm.slane %v632_v33, 4 }
  0x7c   :  { %v681_v26 = vsel %vm357_vm10, %v679_v53, %v659_v34  ;;  %v682_v8 = vsel %vm357_vm10, %v680_v7, %v660_v39 }
  0x7d   :  { %v683_v27 = vsel %vm360_vm12, %v681_v26, %v664_v3  ;;  %v684_v4 = vsel %vm360_vm12, %v682_v8, %v665_v0 }
  0x7e   :  { %v685_v10 = vsel %vm363_vm13, %v683_v27, %v669_v60  ;;  %v686_v24 = vsel %vm363_vm13, %v684_v4, %v670_v42 }
  0x7f   :  { %688 = vst [vmem:[#allocation7 + $0x10] sm:$0xff] %v685_v10 }
  0x80   :  { %689 = vst [vmem:[#allocation7 + $0x18] sm:$0xff] %v686_v24 }
  0x81   :  { %702 = dma.vmem_to_hbm [thread:$0]  %s695_s1, 512, %s697_s23, [#allocation4], %s906_s24, %s906_s24, %s907_s25  }
  0x82   :  { %899 = dma.done.wait [#allocation4], 512  }
  0x83   :  { %900 = vsyncadd [#allocation4], 4294966784 }
  0x84   :  { %707 = vsyncpa [#allocation3], 1 }
  0x85   :  { %708 = vsyncpa [#allocation4], 1 }
  0x86   :  { %709 = vsyncpa [#allocation5], 1 }

</bundles_post_ra>
